<compile_context>
chip_gen: v7x
topology: tpu7x:2x2x1
jax: 0.10.0
libtpu: 0.0.40
codegen_flags: <defaults>
</compile_context>

<pallas_src>
import jax
import jax.numpy as jnp
from jax.experimental import pallas as pl
from jax.experimental.pallas import tpu as pltpu


def _patch_freq_embed_kernel(x_ref, w_ref, b_ref, o_ref):
    """One (batch, time-tile) block.

    x_ref: (n_freq, tt)    -- original (freq, time) layout, no HBM transpose
    w_ref: (n_freq, emb)   -- transposed nn.Linear weight, resident
    b_ref: (1, emb)        -- bias, resident
    o_ref: (tt, emb)       -- lane-dense output tile
    """
    # Transposed contraction: contract dim 0 of x (freq) with dim 0 of w.
    # Mosaic folds the implied LHS transpose into the MXU feed -> no VMEM temp.
    acc = jax.lax.dot_general(
        x_ref[...], w_ref[...],
        dimension_numbers=(((0,), (0,)), ((), ())),
        preferred_element_type=jnp.float32,
    )
    o_ref[...] = (acc + b_ref[...]).astype(o_ref.dtype)


def patch_frequency_embedding(x, weight, bias, *, time_tile=2048, out_dtype=None):
    """
    x:      (batch, n_freq, n_time)  float32 (or bf16)
    weight: (emb_size, n_freq)       PyTorch nn.Linear layout
    bias:   (emb_size,)
    returns (batch, n_time, emb_size) in `out_dtype` (default: x.dtype)
    """
    batch, n_freq, n_time = x.shape
    emb_size = weight.shape[0]
    out_dtype = x.dtype if out_dtype is None else out_dtype

    # Tiny, one-off parameter reshuffles (folded into the checkpoint at model
    # load time in a real deployment).
    w_t = weight.T                     # (n_freq, emb_size)
    b2d = bias.reshape(1, emb_size)    # (1, emb_size)

    # --- time-tile selection -------------------------------------------------
    # tt must be a multiple of 128 unless it spans the full time axis.
    tt = max(128, (int(time_tile) // 128) * 128)
    if n_time <= tt:
        if batch >= 2 or n_time <= 128:
            tt = n_time                               # single full-axis block
        else:
            # batch == 1: split time into >=2 blocks so a v7x chip (2 TCs,
            # sharded over "parallel" grid axes) is fully occupied.
            tt = max(128, (((n_time + 1) // 2 + 127) // 128) * 128)

    n_t_blocks = pl.cdiv(n_time, tt)
    grid = (batch, n_t_blocks)

    # Advisory cost estimate matching the real streamed traffic / out dtype.
    x_bytes = jnp.dtype(x.dtype).itemsize
    w_bytes = jnp.dtype(weight.dtype).itemsize
    o_bytes = jnp.dtype(out_dtype).itemsize
    cost = pl.CostEstimate(
        flops=2 * batch * n_time * n_freq * emb_size,
        transcendentals=0,
        bytes_accessed=(x_bytes * batch * n_freq * n_time
                        + w_bytes * (n_freq * emb_size + emb_size)
                        + o_bytes * batch * n_time * emb_size),
    )

    out = pl.pallas_call(
        _patch_freq_embed_kernel,
        out_shape=jax.ShapeDtypeStruct((batch, n_time, emb_size), out_dtype),
        grid_spec=pltpu.PrefetchScalarGridSpec(
            num_scalar_prefetch=0,
            grid=grid,
            in_specs=[
                # One batch row, all freqs, one time tile (batch dim squeezed)
                # -> kernel sees (n_freq, tt).  Boundary time block is partial;
                # its out-of-bounds columns only feed masked output rows.
                pl.BlockSpec((None, n_freq, tt), lambda b, t: (b, 0, t)),
                # Weight / bias: same block every step -> stay resident.
                pl.BlockSpec((n_freq, emb_size), lambda b, t: (0, 0)),
                pl.BlockSpec((1, emb_size), lambda b, t: (0, 0)),
            ],
            out_specs=pl.BlockSpec((None, tt, emb_size),
                                   lambda b, t: (b, t, 0)),
        ),
        compiler_params=pltpu.CompilerParams(
            # All blocks independent -> shard grid across TensorCores on v7x.
            dimension_semantics=("parallel", "parallel"),
        ),
        cost_estimate=cost,
    )(x, w_t, b2d)

    return out


if __name__ == "__main__":
    key = jax.random.PRNGKey(0)
    kx, kw, kb, kx2, kx3 = jax.random.split(key, 5)

    # Module defaults: n_freq=101, emb_size=256; small batch/time.
    batch, n_freq, emb_size = 2, 101, 256
    weight = jax.random.normal(kw, (emb_size, n_freq), dtype=jnp.float32) * 0.02
    bias = jax.random.normal(kb, (emb_size,), dtype=jnp.float32) * 0.01

    # Case 1: single full-axis time block per batch element.
    n_time = 128
    x = jax.random.normal(kx, (batch, n_freq, n_time), dtype=jnp.float32)
    out = jax.block_until_ready(patch_frequency_embedding(x, weight, bias))
    ref = jnp.einsum("bft,ef->bte", x, weight,
                     precision=jax.lax.Precision.HIGHEST) + bias
    assert out.shape == (batch, n_time, emb_size)
    assert jnp.allclose(out, ref, atol=2e-3, rtol=2e-3)

    # Case 2: multiple time tiles with a ragged tail (exercises the masked
    # partial boundary block — no wrapper pad/slice anymore).
    n_time2 = 320
    x2 = jax.random.normal(kx2, (batch, n_freq, n_time2), dtype=jnp.float32)
    out2 = jax.block_until_ready(
        patch_frequency_embedding(x2, weight, bias, time_tile=128))
    ref2 = jnp.einsum("bft,ef->bte", x2, weight,
                      precision=jax.lax.Precision.HIGHEST) + bias
    assert out2.shape == (batch, n_time2, emb_size)
    assert jnp.allclose(out2, ref2, atol=2e-3, rtol=2e-3)

    # Case 3: batch == 1 with n_time > 128 (exercises the 2-block split so
    # both v7x TensorCores get work) plus a ragged tail.
    n_time3 = 300
    x3 = jax.random.normal(kx3, (1, n_freq, n_time3), dtype=jnp.float32)
    out3 = jax.block_until_ready(patch_frequency_embedding(x3, weight, bias))
    ref3 = jnp.einsum("bft,ef->bte", x3, weight,
                      precision=jax.lax.Precision.HIGHEST) + bias
    assert out3.shape == (1, n_time3, emb_size)
    assert jnp.allclose(out3, ref3, atol=2e-3, rtol=2e-3)

    print("KERNEL_OK")
</pallas_src>

<mosaic_0001>
module attributes {stable_mosaic.version = 11 : i64} {
  func.func @_patch_freq_embed_kernel(%arg0: i32, %arg1: i32, %arg2: memref<1x101x128xf32, #tpu.memory_space<vmem>>, %arg3: memref<101x256xf32, #tpu.memory_space<vmem>>, %arg4: memref<1x256xf32, #tpu.memory_space<vmem>>, %arg5: memref<1x128x256xf32, #tpu.memory_space<vmem>>) attributes {dimension_semantics = [#tpu.dimension_semantics<parallel>, #tpu.dimension_semantics<parallel>], iteration_bounds = array<i64: 2, 1>, scalar_prefetch = 0 : i64, scratch_operands = 0 : i64, tpu.core_type = #tpu.core_type<tc>, window_params = [{transform_indices = @transform_0, window_bounds = array<i64: 1, 101, 128>}, {pipeline_mode = #tpu.pipeline_mode<synchronous>, transform_indices = @transform_1, window_bounds = array<i64: 101, 256>}, {pipeline_mode = #tpu.pipeline_mode<synchronous>, transform_indices = @transform_2, window_bounds = array<i64: 1, 256>}, {transform_indices = @transform_3, window_bounds = array<i64: 1, 128, 256>}]} {
    %c0 = arith.constant 0 : index
    %c0_0 = arith.constant 0 : index
    %c0_1 = arith.constant 0 : index
    %0 = vector.load %arg2[%c0, %c0_0, %c0_1] : memref<1x101x128xf32, #tpu.memory_space<vmem>>, vector<1x101x128xf32>
    %1 = vector.shape_cast %0 : vector<1x101x128xf32> to vector<101x128xf32>
    %c0_2 = arith.constant 0 : index
    %c0_3 = arith.constant 0 : index
    %2 = vector.load %arg3[%c0_2, %c0_3] : memref<101x256xf32, #tpu.memory_space<vmem>>, vector<101x256xf32>
    %cst = arith.constant dense<0.000000e+00> : vector<128x256xf32>
    %3 = tpu.matmul %1, %2, %cst {dimension_numbers = #tpu.dot_dimension_numbers<[0], [0], [1], [1], [0, 1, 1, 1], [], []>} : vector<101x128xf32>, vector<101x256xf32>, vector<128x256xf32> -> vector<128x256xf32>
    %c0_4 = arith.constant 0 : index
    %c0_5 = arith.constant 0 : index
    %4 = vector.load %arg4[%c0_4, %c0_5] : memref<1x256xf32, #tpu.memory_space<vmem>>, vector<1x256xf32>
    %5 = vector.broadcast %4 : vector<1x256xf32> to vector<128x256xf32>
    %6 = arith.addf %3, %5 : vector<128x256xf32>
    %c0_6 = arith.constant 0 : index
    %c0_7 = arith.constant 0 : index
    %c0_8 = arith.constant 0 : index
    %7 = vector.load %arg5[%c0_6, %c0_7, %c0_8] : memref<1x128x256xf32, #tpu.memory_space<vmem>>, vector<1x128x256xf32>
    %8 = vector.shape_cast %7 : vector<1x128x256xf32> to vector<128x256xf32>
    %9 = vector.shape_cast %6 : vector<128x256xf32> to vector<1x128x256xf32>
    tpu.vector_store %arg5[%c0_6, %c0_7, %c0_8], %9 {strides = array<i32>} : memref<1x128x256xf32, #tpu.memory_space<vmem>>, vector<1x128x256xf32>,
    return
  }
  func.func @transform_0(%arg0: i32, %arg1: i32) -> (i32, i32, i32) {
    %c0_i32 = arith.constant 0 : i32
    %c0_i32_0 = arith.constant 0 : i32
    return %arg0, %c0_i32, %arg1 : i32, i32, i32
  }
  func.func @transform_1(%arg0: i32, %arg1: i32) -> (i32, i32) {
    %c0_i32 = arith.constant 0 : i32
    %c0_i32_0 = arith.constant 0 : i32
    %c0_i32_1 = arith.constant 0 : i32
    return %c0_i32, %c0_i32_0 : i32, i32
  }
  func.func @transform_2(%arg0: i32, %arg1: i32) -> (i32, i32) {
    %c0_i32 = arith.constant 0 : i32
    %c0_i32_0 = arith.constant 0 : i32
    %c0_i32_1 = arith.constant 0 : i32
    return %c0_i32, %c0_i32_0 : i32, i32
  }
  func.func @transform_3(%arg0: i32, %arg1: i32) -> (i32, i32, i32) {
    %c0_i32 = arith.constant 0 : i32
    %c0_i32_0 = arith.constant 0 : i32
    return %arg0, %arg1, %c0_i32 : i32, i32, i32
  }
}

</mosaic_0001>

<bundles_post_ra>
// kernel: tpu_custom_call.1
= control target key start
LH: loop header
LB: loop body
LE: loop exit
PB: predicated region body
PF: predicated region fallthrough
CT: control target
= control target key end

     0   :  { %8 = vsyncpa [#allocation3], 0  ;;  %s1173_s0 = inlined_call_operand.vmem [shape: f32[2,101,128], index: 0, kind: input, shape index: {}]   ;;  %s1174_s1 = inlined_call_operand.vmem [shape: f32[101,256], index: 1, kind: input, shape index: {}]   ;;  %s1175_s2 = inlined_call_operand.vmem [shape: f32[1,256], index: 2, kind: input, shape index: {}]   ;;  %s1176_s3 = inlined_call_operand.hbm [shape: f32[2,128,256], index: 3, kind: output, shape index: {}]  }
   0x1   :  { %10 = vsyncpa [#allocation3 + $0x1], 0  ;;  %s855_s12 = smov 0   ;;  %s857_s13 = smov 0  }
   0x2   :  { %s859_s14 = smov 0   ;;  %s861_s15 = smov 0  }
   0x3   :  { %s863_s16 = smov 0   ;;  %s865_s17 = smov 0  }
   0x4 LB: > { %s623_s18 = sadd.s32 4294967295, %s829_s17   ;;  %s624_s19 = sadd.s32 4294967294, %s829_s17   ;;  %s829_s17 = sphi %s865_s17, %s16_s17   ;;  %s825_s16 = sphi %s863_s16, %s1183_s16   ;;  %s821_s15 = sphi %s861_s15, %s1182_s15   ;;  %s817_s14 = sphi %s859_s14, %s1181_s14   ;;  %s813_s13 = sphi %s857_s13, %s1180_s13   ;;  %s809_s12 = sphi %s855_s12, %s1179_s12  }
   0x5   : > { %s28_s20 = sadd.s32 1, %s825_s16  ;;  %s107_s21 = sadd.s32 1, %s817_s14 }
   0x6   : > { %p30_p0 = scmp.ge.s32.totalorder %s28_s20, 2  ;;  %p117_p1 = scmp.ne.s32.totalorder %s817_s14, %s813_s13 }
   0x7   : > { %p118_p2 = scmp.eq.s32.totalorder %s623_s18, 1  ;;  %p123_p3 = scmp.ne.s32.totalorder %s813_s13, %s809_s12 }
   0x8   : > { %s1185_s20 = smov (%p30_p0, %s28_s20), 0  ;;  %p124_p5 = scmp.eq.s32.totalorder %s624_s19, 1 }
   0x9   : > { %p895_p4 = por %p118_p2, %p117_p1  ;;  %s102_s23 = ssub.s32 %s825_s16, %s1185_s20 }
   0xa   : > { %p627_p6 = scmp.ge.s32.totalorder %s829_s17, 1  ;;  %p105_p7 = scmp.eq.s32.totalorder %s102_s23, 0 }
   0xb   : > { %p902_p8 = por %p124_p5, %p123_p3  ;;  %p159_p9 = scmp.lt.s32.totalorder %s829_s17, 3 }
   0xc   : > { %s908_s25 = scalar_select %p105_p7, %s817_s14, %s107_s21  }
   0xd   : > { %p160_p10 = pnand %p627_p6, %p159_p9 }
   0xe   : > { %p186_p11 = scmp.lt.s32.totalorder (!%p160_p10), %s821_s15, 1  ;;  %v209_v0 = vld [vmem:[%s1174_s1 + $0x8] sm:$0xff] (!%p160_p10)  ;;  %v211_v1 = vld [vmem:[%s1174_s1 + $0x18] sm:$0xff] (!%p160_p10)  ;;  %v208_v2 = vld [vmem:[%s1174_s1] sm:$0xff] (!%p160_p10)  ;;  %v831_v7 = vmov (!%p160_p10), 0.0   ;;  %vm327_vm0 = vcmask (!%p160_p10), 1044480  }
   0xf   : > { %163 = sbr.rel (%p160_p10) target bundleno = 447 (0x1bf), region = 32  ;;  %v654_v3 = vpack.c.bf16 (!%p160_p10), %v211_v1, %v209_v0  ;;  %v210_v4 = vld [vmem:[%s1174_s1 + $0x10] sm:$0xff] (!%p160_p10)  ;;  %v213_v5 = vld [vmem:[%s1174_s1 + $0x28] sm:$0xff] (!%p160_p10)  ;;  %v215_v6 = vld [vmem:[%s1174_s1 + $0x38] sm:$0xff] (!%p160_p10)  ;;  %398 = vmatprep.mubr.f32.mxu0 (!%p160_p10), %v831_v7  ;;  %446 = vmatprep.mubr.f32.mxu1 (!%p160_p10), %v831_v7  ;;  %vm278_vm1 = vcmask (!%p160_p10), 826368   ;;  %s832_s27 = smov (!%p160_p10), [#allocation2]  }
  0x10   : > { %v656_v8 = vpack.c.bf16 (!%p160_p10), %v210_v4, %v208_v2  ;;  %v658_v9 = vpack.c.bf16 (!%p160_p10), %v215_v6, %v213_v5  ;;  %v212_v10 = vld [vmem:[%s1174_s1 + $0x20] sm:$0xff] (!%p160_p10)  ;;  %v214_v11 = vld [vmem:[%s1174_s1 + $0x30] sm:$0xff] (!%p160_p10)  ;;  %v217_v12 = vld [vmem:[%s1174_s1 + $0x48] sm:$0xff] (!%p160_p10)  ;;  %v236_v4 = vlaneseq (!%p160_p10)  ;;  %s755_s28 = sshll.u32 (!%p160_p10), %s832_s27, 4  ;;  %s756_s28 = int_to_ptr.vmem [resolvable:$false] %s755_s28 }
  0x11   : > { %655 = vmatprep.subr.bf16.mxu0 (!%p160_p10), %v654_v3  ;;  %v219_v13 = vld [vmem:[%s1174_s1 + $0x58] sm:$0xff] (!%p160_p10)  ;;  %678 = vmatprep.subr.bf16.mxu1 (!%p160_p10), %v654_v3  ;;  %v660_v14 = vpack.c.bf16 (!%p160_p10), %v214_v11, %v212_v10  ;;  %v216_v16 = vld [vmem:[%s1174_s1 + $0x40] sm:$0xff] (!%p160_p10)  ;;  %v218_v17 = vld [vmem:[%s1174_s1 + $0x50] sm:$0xff] (!%p160_p10)  ;;  %s757_s29 = scalar_lea.vmem (!%p160_p10), %s756_s28, 8192 }
  0x12   : > { %657 = vmatpush1.bf16.msra.mxu0 (!%p160_p10), %v656_v8  ;;  %685 = vmatpush1.bf16.msra.mxu1 (!%p160_p10), %v656_v8  ;;  %v662_v15 = vpack.c.bf16 (!%p160_p10), %v219_v13, %v217_v12  ;;  %v221_v18 = vld [vmem:[%s1174_s1 + $0x68] sm:$0xff] (!%p160_p10)  ;;  %v223_v19 = vld [vmem:[%s1174_s1 + $0x78] sm:$0xff] (!%p160_p10)  ;;  %v664_v21 = vpack.c.bf16 (!%p160_p10), %v218_v17, %v216_v16  ;;  %v220_v24 = vld [vmem:[%s1174_s1 + $0x60] sm:$0xff] (!%p160_p10)  ;;  %v237_v5 = vshrl.u32 (!%p160_p10), %v236_v4, 7 }
  0x13   : > { %659 = vmatprep.subr.bf16.mxu0 (!%p160_p10), %v658_v9  ;;  %679 = vmatprep.subr.bf16.mxu1 (!%p160_p10), %v658_v9  ;;  %v666_v23 = vpack.c.bf16 (!%p160_p10), %v223_v19, %v221_v18  ;;  %v222_v25 = vld [vmem:[%s1174_s1 + $0x70] sm:$0xff] (!%p160_p10)  ;;  %v225_v26 = vld [vmem:[%s1174_s1 + $0x88] sm:$0xff] (!%p160_p10)  ;;  %v227_v27 = vld [vmem:[%s1174_s1 + $0x98] sm:$0xff] (!%p160_p10) }
  0x14   : > { %v668_v28 = vpack.c.bf16 (!%p160_p10), %v222_v25, %v220_v24  ;;  %v670_v30 = vpack.c.bf16 (!%p160_p10), %v227_v27, %v225_v26  ;;  %v224_v31 = vld [vmem:[%s1174_s1 + $0x80] sm:$0xff] (!%p160_p10)  ;;  %v226_v32 = vld [vmem:[%s1174_s1 + $0x90] sm:$0xff] (!%p160_p10)  ;;  %v229_v33 = vld [vmem:[%s1174_s1 + $0xa8] sm:$0xff] (!%p160_p10)  ;;  %v238_v6 = vsub.s32 (!%p160_p10), 0, %v237_v5  ;;  %v242_v9 = vsub.s32 (!%p160_p10), 1, %v237_v5 }
  0x15   : > { %v231_v34 = vld [vmem:[%s1174_s1 + $0xb8] sm:$0xff] (!%p160_p10)  ;;  %v672_v35 = vpack.c.bf16 (!%p160_p10), %v226_v32, %v224_v31  ;;  %v228_v38 = vld [vmem:[%s1174_s1 + $0xa0] sm:$0xff] (!%p160_p10)  ;;  %v230_v39 = vld [vmem:[%s1174_s1 + $0xb0] sm:$0xff] (!%p160_p10) }
  0x16   : > { %s187_s11 = scalar_select %p186_p11, %s821_s15, 1  ;;  %661 = vmatpush1.bf16.msra.mxu0 %v660_v14  ;;  %686 = vmatpush1.bf16.msra.mxu1 %v660_v14  ;;  %v674_v37 = vpack.c.bf16 %v231_v34, %v229_v33  ;;  %v676_v40 = vpack.c.bf16 %v230_v39, %v228_v38  ;;  %v233_v42 = vld [vmem:[%s1174_s1 + $0xc8] sm:$0x1f]  ;;  %v232_v44 = vld [vmem:[%s1174_s1 + $0xc0] sm:$0x1f] }
  0x17   : > { %663 = vmatprep.subr.bf16.mxu0 %v662_v15  ;;  %680 = vmatprep.subr.bf16.mxu1 %v662_v15  ;;  %v234_v8 = vld [vmem:[%s1175_s2] sm:$0x3] }
  0x18   : > { %s692_s30 = smul.u32 104, %s187_s11  ;;  %v1046_v10 = vrot.slane %v234_v8, %v238_v6  ;;  %v1048_v11 = vrot.slane %v234_v8, %v242_v9  ;;  %s653_s11 = sshll.u32 %s821_s15, 12 }
  0x19   : > { %s1118_s23 = scalar_lea.hbm %s1176_s3, %s653_s11 }
  0x1a   : > { %s953_s10 = scalar_lea.vmem %s1173_s0, %s692_s30  ;;  %665 = vmatpush1.bf16.msra.mxu0 %v664_v21  ;;  %687 = vmatpush1.bf16.msra.mxu1 %v664_v21 }
  0x1b   : > { %v195_v20 = vld [vmem:[%s953_s10] sm:$0xff]  ;;  %v196_v22 = vld [vmem:[%s953_s10 + $0x8] sm:$0xff]  ;;  %v197_v29 = vld [vmem:[%s953_s10 + $0x10] sm:$0xff]  ;;  %667 = vmatprep.subr.bf16.mxu0 %v666_v23  ;;  %681 = vmatprep.subr.bf16.mxu1 %v666_v23 }
  0x1c   : > { %246 = vxpose.xlu0.b32.start [1/13] (short) %v195_v20, 128  ;;  %v198_v36 = vld [vmem:[%s953_s10 + $0x18] sm:$0xff]  ;;  %v199_v41 = vld [vmem:[%s953_s10 + $0x20] sm:$0xff]  ;;  %v200_v43 = vld [vmem:[%s953_s10 + $0x28] sm:$0xff] }
  0x1d   : > { %v201_v45 = vld [vmem:[%s953_s10 + $0x30] sm:$0xff]  ;;  %v202_v46 = vld [vmem:[%s953_s10 + $0x38] sm:$0xff]  ;;  %v203_v47 = vld [vmem:[%s953_s10 + $0x40] sm:$0xff] }
  0x1e   : > { %669 = vmatpush1.bf16.msra.mxu0 %v668_v28  ;;  %688 = vmatpush1.bf16.msra.mxu1 %v668_v28  ;;  %v204_v48 = vld [vmem:[%s953_s10 + $0x48] sm:$0xff]  ;;  %v205_v49 = vld [vmem:[%s953_s10 + $0x50] sm:$0xff]  ;;  %v206_v50 = vld [vmem:[%s953_s10 + $0x58] sm:$0xff] }
  0x1f   : > { %671 = vmatprep.subr.bf16.mxu0 %v670_v30  ;;  %682 = vmatprep.subr.bf16.mxu1 %v670_v30  ;;  %v207_v51 = vld [vmem:[%s953_s10 + $0x60] sm:$0x1f]  ;;  %s183_s10 = sand.u32 1, %s813_s13  }
  0x20   : > { %247 = vxpose.xlu0.b32.cont [2/13] (short) %v196_v22, 128  ;;  %s628_s8 = sshll.u32 %s183_s10, 8  ;;  %s1127_s15 = scalar_lea.sflag [#allocation3], %s183_s10 }
  0x21   : > { %s1052_s9 = scalar_lea.vmem [#allocation2], %s628_s8 }
  0x22   : > { %673 = vmatpush1.bf16.msra.mxu0 %v672_v35  ;;  %689 = vmatpush1.bf16.msra.mxu1 %v672_v35  ;;  %s544_s18 = sshll.u32 %s1052_s9, 4  ;;  %s1120_s18 = int_to_ptr.vmem [resolvable:$true] %s544_s18 }
  0x23   : > { %675 = vmatprep.subr.bf16.mxu0 %v674_v37  ;;  %683 = vmatprep.subr.bf16.mxu1 %v674_v37  ;;  %s751_s26 = scalar_lea.vmem %s1120_s18, 4096  ;;  %p758_p1 = scmp.lt.s32.totalorder %s1120_s18, %s756_s28 }
  0x24   : > { %248 = vxpose.xlu0.b32.cont [3/13] (short) %v197_v29, 128  ;;  %p752_p12 = scmp.ne.s32.totalorder %s1120_s18, %s751_s26  ;;  %p759_p2 = scmp.lt.s32.totalorder %s757_s29, %s751_s26 }
  0x26   : > { %677 = vmatpush1.bf16.msra.mxu0 %v676_v40  ;;  %690 = vmatpush1.bf16.msra.mxu1 %v676_v40  ;;  %p753_p13 = pnand %p752_p12, %p895_p4  ;;  %p760_p3 = por %p759_p2, %p758_p1 }
  0x27   : > { %630 = vmatprep.subr.msk.mxu0 %vm327_vm0, %v233_v42  ;;  %684 = vmatprep.subr.msk.mxu1 %vm327_vm0, %v233_v42 }
  0x28   : > { %249 = vxpose.xlu0.b32.cont [4/13] (short) %v198_v36, 128  ;;  %p754_p0 = pneg %p753_p13 }
  0x2a   : > { %631 = vmatpush1.msk.msra.mxu0 %vm327_vm0, %v232_v44  ;;  %691 = vmatpush1.msk.msra.mxu1 %vm327_vm0, %v232_v44  ;;  %p761_p5 = pnand %p760_p3, %p754_p0 }
  0x2c   : > { %250 = vxpose.xlu0.b32.cont [5/13] (short) %v199_v41, 128 }
  0x30   : > { %251 = vxpose.xlu0.b32.cont [6/13] (short) %v200_v43, 128 }
  0x34   : > { %252 = vxpose.xlu0.b32.cont [7/13] (short) %v201_v45, 128 }
  0x38   : > { %253 = vxpose.xlu0.b32.cont [8/13] (short) %v202_v46, 128 }
  0x3c   : > { %254 = vxpose.xlu0.b32.cont [9/13] (short) %v203_v47, 128 }
  0x40   : > { %255 = vxpose.xlu0.b32.cont [10/13] (short) %v204_v48, 128 }
  0x44   : > { %256 = vxpose.xlu0.b32.cont [11/13] (short) %v205_v49, 128 }
  0x48   : > { %257 = vxpose.xlu0.b32.cont [12/13] (short) %v206_v50, 128 }
  0x4c   : > { %258 = vxpose.xlu0.b32.end [13/13] (short) %v207_v51, 128 }
  0x9c   : > { %v262_v52 = vpop.trf.xlu0 }
  0x9d   : > { %632 = vmatmul.mubr.msk.f32.vlgmr.msra.gmra.mrb[0].mxu0 %vm278_vm1, %v262_v52 }
  0x9e   : > { %404 = vmatprep.mubr.f32.mxu0 %v831_v7 }
  0xa0   : > { %v263_v53 = vpop.trf.xlu0 }
  0xa1   : > { %633 = vmatmul.mubr.msk.f32.gmra.mrb[2].mxu0 %vm278_vm1, %v263_v53 }
  0xa2   : > { %410 = vmatprep.mubr.f32.mxu0 %v831_v7 }
  0xa4   : > { %v264_v54 = vpop.trf.xlu0 }
  0xa5   : > { %634 = vmatmul.mubr.msk.f32.gmra.mrb[4].mxu0 %vm278_vm1, %v264_v54 }
  0xa6   : > { %416 = vmatprep.mubr.f32.mxu0 %v831_v7 }
  0xa8   : > { %v265_v55 = vpop.trf.xlu0 }
  0xa9   : > { %635 = vmatmul.mubr.msk.f32.gmra.mrb[6].mxu0 %vm278_vm1, %v265_v55 }
  0xaa   : > { %422 = vmatprep.mubr.f32.mxu0 %v831_v7 }
  0xac   : > { %v266_v56 = vpop.trf.xlu0 }
  0xad   : > { %636 = vmatmul.mubr.msk.f32.gmra.mrb[8].mxu0 %vm278_vm1, %v266_v56 }
  0xae   : > { %428 = vmatprep.mubr.f32.mxu0 %v831_v7 }
  0xb0   : > { %v267_v57 = vpop.trf.xlu0 }
  0xb1   : > { %637 = vmatmul.mubr.msk.f32.gmra.mrb[10].mxu0 %vm278_vm1, %v267_v57 }
  0xb2   : > { %434 = vmatprep.mubr.f32.mxu0 %v831_v7 }
  0xb4   : > { %v268_v58 = vpop.trf.xlu0 }
  0xb5   : > { %638 = vmatmul.mubr.msk.f32.gmra.mrb[12].mxu0 %vm278_vm1, %v268_v58 }
  0xb6   : > { %440 = vmatprep.mubr.f32.mxu0 %v831_v7 }
  0xb8   : > { %v269_v59 = vpop.trf.xlu0 }
  0xb9   : > { %639 = vmatmul.mubr.msk.f32.gmra.mrb[14].mxu0 %vm278_vm1, %v269_v59 }
  0xbc   : > { %v270_v60 = vpop.trf.xlu0 }
  0xbd   : > { %640 = vmatmul.mubr.msk.f32.vlgmr.msra.gmra.mrb[0].mxu1 %vm278_vm1, %v270_v60 }
  0xbe   : > { %452 = vmatprep.mubr.f32.mxu1 %v831_v7 }
  0xc0   : > { %v271_v61 = vpop.trf.xlu0 }
  0xc1   : > { %641 = vmatmul.mubr.msk.f32.gmra.mrb[2].mxu1 %vm278_vm1, %v271_v61 }
  0xc2   : > { %458 = vmatprep.mubr.f32.mxu1 %v831_v7 }
  0xc4   : > { %v272_v62 = vpop.trf.xlu0 }
  0xc5   : > { %642 = vmatmul.mubr.msk.f32.gmra.mrb[4].mxu1 %vm278_vm1, %v272_v62 }
  0xc6   : > { %464 = vmatprep.mubr.f32.mxu1 %v831_v7 }
  0xc8   : > { %v273_v63 = vpop.trf.xlu0 }
  0xc9   : > { %643 = vmatmul.mubr.msk.f32.gmra.mrb[6].mxu1 %vm278_vm1, %v273_v63 }
  0xca   : > { %470 = vmatprep.mubr.f32.mxu1 %v831_v7 }
  0xcc   : > { %v274_v0 = vpop.trf.xlu0 }
  0xcd   : > { %644 = vmatmul.mubr.msk.f32.gmra.mrb[8].mxu1 %vm278_vm1, %v274_v0 }
  0xce   : > { %476 = vmatprep.mubr.f32.mxu1 %v831_v7 }
  0xd0   : > { %v275_v1 = vpop.trf.xlu0 }
  0xd1   : > { %645 = vmatmul.mubr.msk.f32.gmra.mrb[10].mxu1 %vm278_vm1, %v275_v1 }
  0xd2   : > { %482 = vmatprep.mubr.f32.mxu1 %v831_v7 }
  0xd4   : > { %v276_v2 = vpop.trf.xlu0 }
  0xd5   : > { %646 = vmatmul.mubr.msk.f32.gmra.mrb[12].mxu1 %vm278_vm1, %v276_v2 }
  0xd6   : > { %488 = vmatprep.mubr.f32.mxu1 %v831_v7 }
  0xd8   : > { %v277_v3 = vpop.trf.xlu0 }
  0xd9   : > { %647 = vmatmul.mubr.msk.f32.gmra.mrb[14].mxu1 %vm278_vm1, %v277_v3 }
 0x170   : > { %v400_v12 = vpop.f32.mrb[0].mxu0 }
 0x171   : > { %v401_v7 = vadd.f32 %v400_v12, %v1046_v10  ;;  %v402_v13 = vpop.f32.mrb[1].mxu0 }
 0x172   : > { %v403_v14 = vadd.f32 %v402_v13, %v1048_v11 }
 0x173   : > { %495 = vst [vmem:[%s1052_s9] sm:$0xff] %v401_v7 }
 0x174   : > { %496 = vst [vmem:[%s1052_s9 + $0x8] sm:$0xff] %v403_v14  ;;  %v406_v15 = vpop.f32.mrb[2].mxu0 }
 0x175   : > { %v407_v16 = vadd.f32 %v406_v15, %v1046_v10  ;;  %v408_v17 = vpop.f32.mrb[3].mxu0 }
 0x176   : > { %v409_v18 = vadd.f32 %v408_v17, %v1048_v11 }
 0x177   : > { %497 = vst [vmem:[%s1052_s9 + $0x10] sm:$0xff] %v407_v16 }
 0x178   : > { %498 = vst [vmem:[%s1052_s9 + $0x18] sm:$0xff] %v409_v18  ;;  %v412_v19 = vpop.f32.mrb[4].mxu0 }
 0x179   : > { %v413_v20 = vadd.f32 %v412_v19, %v1046_v10  ;;  %v414_v21 = vpop.f32.mrb[5].mxu0 }
 0x17a   : > { %v415_v22 = vadd.f32 %v414_v21, %v1048_v11 }
 0x17b   : > { %499 = vst [vmem:[%s1052_s9 + $0x20] sm:$0xff] %v413_v20 }
 0x17c   : > { %500 = vst [vmem:[%s1052_s9 + $0x28] sm:$0xff] %v415_v22  ;;  %v418_v23 = vpop.f32.mrb[6].mxu0 }
 0x17d   : > { %v419_v24 = vadd.f32 %v418_v23, %v1046_v10  ;;  %v420_v25 = vpop.f32.mrb[7].mxu0 }
 0x17e   : > { %v421_v26 = vadd.f32 %v420_v25, %v1048_v11 }
 0x17f   : > { %501 = vst [vmem:[%s1052_s9 + $0x30] sm:$0xff] %v419_v24 }
 0x180   : > { %502 = vst [vmem:[%s1052_s9 + $0x38] sm:$0xff] %v421_v26  ;;  %v424_v27 = vpop.f32.mrb[8].mxu0 }
 0x181   : > { %v425_v28 = vadd.f32 %v424_v27, %v1046_v10  ;;  %v426_v29 = vpop.f32.mrb[9].mxu0 }
 0x182   : > { %v427_v30 = vadd.f32 %v426_v29, %v1048_v11 }
 0x183   : > { %503 = vst [vmem:[%s1052_s9 + $0x40] sm:$0xff] %v425_v28 }
 0x184   : > { %504 = vst [vmem:[%s1052_s9 + $0x48] sm:$0xff] %v427_v30  ;;  %v430_v31 = vpop.f32.mrb[10].mxu0 }
 0x185   : > { %v431_v32 = vadd.f32 %v430_v31, %v1046_v10  ;;  %v432_v33 = vpop.f32.mrb[11].mxu0 }
 0x186   : > { %v433_v34 = vadd.f32 %v432_v33, %v1048_v11 }
 0x187   : > { %505 = vst [vmem:[%s1052_s9 + $0x50] sm:$0xff] %v431_v32 }
 0x188   : > { %506 = vst [vmem:[%s1052_s9 + $0x58] sm:$0xff] %v433_v34  ;;  %v436_v35 = vpop.f32.mrb[12].mxu0 }
 0x189   : > { %v437_v36 = vadd.f32 %v436_v35, %v1046_v10  ;;  %v438_v37 = vpop.f32.mrb[13].mxu0 }
 0x18a   : > { %v439_v38 = vadd.f32 %v438_v37, %v1048_v11 }
 0x18b   : > { %507 = vst [vmem:[%s1052_s9 + $0x60] sm:$0xff] %v437_v36 }
 0x18c   : > { %508 = vst [vmem:[%s1052_s9 + $0x68] sm:$0xff] %v439_v38  ;;  %v442_v39 = vpop.f32.mrb[14].mxu0 }
 0x18d   : > { %v443_v40 = vadd.f32 %v442_v39, %v1046_v10  ;;  %v444_v41 = vpop.f32.mrb[15].mxu0 }
 0x18e   : > { %v445_v42 = vadd.f32 %v444_v41, %v1048_v11 }
 0x18f   : > { %509 = vst [vmem:[%s1052_s9 + $0x70] sm:$0xff] %v443_v40 }
 0x190   : > { %510 = vst [vmem:[%s1052_s9 + $0x78] sm:$0xff] %v445_v42  ;;  %v448_v43 = vpop.f32.mrb[0].mxu1 }
 0x191   : > { %v449_v44 = vadd.f32 %v448_v43, %v1046_v10  ;;  %v450_v45 = vpop.f32.mrb[1].mxu1 }
 0x192   : > { %v451_v46 = vadd.f32 %v450_v45, %v1048_v11 }
 0x193   : > { %511 = vst [vmem:[%s1052_s9 + $0x80] sm:$0xff] %v449_v44 }
 0x194   : > { %512 = vst [vmem:[%s1052_s9 + $0x88] sm:$0xff] %v451_v46  ;;  %v454_v47 = vpop.f32.mrb[2].mxu1 }
 0x195   : > { %v455_v48 = vadd.f32 %v454_v47, %v1046_v10  ;;  %v456_v49 = vpop.f32.mrb[3].mxu1 }
 0x196   : > { %v457_v50 = vadd.f32 %v456_v49, %v1048_v11 }
 0x197   : > { %513 = vst [vmem:[%s1052_s9 + $0x90] sm:$0xff] %v455_v48 }
 0x198   : > { %514 = vst [vmem:[%s1052_s9 + $0x98] sm:$0xff] %v457_v50  ;;  %v460_v51 = vpop.f32.mrb[4].mxu1 }
 0x199   : > { %v461_v52 = vadd.f32 %v460_v51, %v1046_v10  ;;  %v462_v53 = vpop.f32.mrb[5].mxu1 }
 0x19a   : > { %v463_v54 = vadd.f32 %v462_v53, %v1048_v11 }
 0x19b   : > { %515 = vst [vmem:[%s1052_s9 + $0xa0] sm:$0xff] %v461_v52 }
 0x19c   : > { %516 = vst [vmem:[%s1052_s9 + $0xa8] sm:$0xff] %v463_v54  ;;  %v466_v55 = vpop.f32.mrb[6].mxu1 }
 0x19d   : > { %v467_v56 = vadd.f32 %v466_v55, %v1046_v10  ;;  %v468_v57 = vpop.f32.mrb[7].mxu1 }
 0x19e   : > { %v469_v58 = vadd.f32 %v468_v57, %v1048_v11 }
 0x19f   : > { %517 = vst [vmem:[%s1052_s9 + $0xb0] sm:$0xff] %v467_v56 }
 0x1a0   : > { %518 = vst [vmem:[%s1052_s9 + $0xb8] sm:$0xff] %v469_v58  ;;  %v472_v59 = vpop.f32.mrb[8].mxu1 }
 0x1a1   : > { %v473_v60 = vadd.f32 %v472_v59, %v1046_v10  ;;  %v474_v61 = vpop.f32.mrb[9].mxu1 }
 0x1a2   : > { %v475_v62 = vadd.f32 %v474_v61, %v1048_v11 }
 0x1a3   : > { %519 = vst [vmem:[%s1052_s9 + $0xc0] sm:$0xff] %v473_v60 }
 0x1a4   : > { %520 = vst [vmem:[%s1052_s9 + $0xc8] sm:$0xff] %v475_v62  ;;  %v478_v63 = vpop.f32.mrb[10].mxu1 }
 0x1a5   : > { %v479_v0 = vadd.f32 %v478_v63, %v1046_v10  ;;  %v480_v1 = vpop.f32.mrb[11].mxu1 }
 0x1a6   : > { %v481_v2 = vadd.f32 %v480_v1, %v1048_v11 }
 0x1a7   : > { %521 = vst [vmem:[%s1052_s9 + $0xd0] sm:$0xff] %v479_v0 }
 0x1a8   : > { %522 = vst [vmem:[%s1052_s9 + $0xd8] sm:$0xff] %v481_v2  ;;  %v484_v3 = vpop.f32.mrb[12].mxu1 }
 0x1a9   : > { %v485_v4 = vadd.f32 %v484_v3, %v1046_v10  ;;  %v486_v5 = vpop.f32.mrb[13].mxu1 }
 0x1aa   : > { %v487_v6 = vadd.f32 %v486_v5, %v1048_v11 }
 0x1ab   : > { %523 = vst [vmem:[%s1052_s9 + $0xe0] sm:$0xff] %v485_v4 }
 0x1ac   : > { %524 = vst [vmem:[%s1052_s9 + $0xe8] sm:$0xff] %v487_v6  ;;  %v490_v8 = vpop.f32.mrb[14].mxu1 }
 0x1ad   : > { %v491_v9 = vadd.f32 %v490_v8, %v1046_v10  ;;  %v492_v12 = vpop.f32.mrb[15].mxu1 }
 0x1ae   : > { %v493_v7 = vadd.f32 %v492_v12, %v1048_v11 }
 0x1af   : > { %525 = vst [vmem:[%s1052_s9 + $0xf0] sm:$0xff] %v491_v9 }
 0x1b0   : > { %526 = vst [vmem:[%s1052_s9 + $0xf8] sm:$0xff] %v493_v7 }
 0x1b1   : > { %764 = shalt.err (!%p761_p5)
}
 0x1b2   : > { %s765_s30 = scalar_lea.hbm %s1118_s23, 4096  ;;  %s769_s10 = scalar_lea.hbm %s1176_s3, 8192 }
 0x1b3   : > { %p766_p6 = scmp.ne.s32.totalorder %s1118_s23, %s765_s30  ;;  %p770_p10 = scmp.lt.u32.totalorder %s1118_s23, %s1176_s3 }
 0x1b4   : > { %p771_p11 = scmp.lt.u32.totalorder %s769_s10, %s765_s30  ;;  %p773_p13 = scmp.lt.u32.totalorder %s765_s30, %s1118_s23 }
 0x1b5   : > { %p767_p7 = pnand %p766_p6, %p895_p4 }
 0x1b6   : > { %p772_p12 = por %p771_p11, %p770_p10 }
 0x1b7   : > { %p768_p9 = pneg %p767_p7 }
 0x1b8   : > { %p774_p0 = por %p773_p13, %p772_p12 }
 0x1ba   : > { %p775_p1 = pnand %p774_p0, %p768_p9 }
 0x1bc   : > { %778 = shalt.err (!%p775_p1)
}
 0x1bd   : > { %s833_s8 = smov 256   ;;  %s834_s9 = smov 16  }
 0x1be   : > { %693 = dma.vmem_to_hbm [thread:$0]  (%p895_p4), %s1120_s18, 4096, %s1118_s23, %s1127_s15, %s833_s8, %s833_s8, %s834_s9  }
 0x1bf PF: > { %p699_p2 = scmp.ge.s32.totalorder %s829_s17, 2  ;;  %s559_s11 = sand.u32 1, %s809_s12  }
 0x1c0   : > { %s560_s19 = scalar_lea.sflag [#allocation3], %s559_s11 }
 0x1c1   : > { %p696_p3 = pnand %p699_p2, %p902_p8 }
 0x1c3   : > { %804 = dma.done.wait (!%p696_p3), %s560_s19, 4096  }
 0x1c4   : > { %806 = vsyncadd (!%p696_p3), %s560_s19, 4294963200  ;;  %s16_s17 = sadd.s32 1, %s829_s17   ;;  %s1179_s12 = smov %s813_s13 }
 0x1c5   : > { %p13_p5 = scmp.ge.s32.totalorder %s16_s17, 4   ;;  %s1180_s13 = smov %s817_s14 }
 0x1c6   : > { %s1181_s14 = smov %s908_s25  ;;  %s1182_s15 = smov %s825_s16 }
 0x1c7   : > { %s1183_s16 = smov %s1185_s20  ;;  %15 = sbr.rel (!%p13_p5) target bundleno = 4 (0x4), region = 67 }
 0x1ce   :  { %565 = vsyncpa [#allocation3], 1 }
 0x1cf   :  { %567 = vsyncpa [#allocation3 + $0x1], 1 }

</bundles_post_ra>
